<compile_context>
chip_gen: v7x
topology: tpu7x:2x2x1
jax: 0.10.0
libtpu: 0.0.40
codegen_flags: <defaults>
</compile_context>

<pallas_src>
import jax
import jax.numpy as jnp
from jax.experimental import pallas as pl
from jax.experimental.pallas import tpu as pltpu


def _round_up(a, b):
    return (a + b - 1) // b * b


def _tile_config():
    """Generation-aware tile sizes / VMEM budget."""
    vmem_bytes = 128 * 1024 * 1024
    try:
        vmem_bytes = int(getattr(pltpu.get_tpu_info(), "vmem_capacity_bytes",
                                 vmem_bytes))
    except Exception:
        pass
    if vmem_bytes <= 64 * 1024 * 1024:
        # v7x-class (64 MiB VMEM / core): trade ffn chunk for token tile
        # (weight-stream arithmetic intensity ~ tT flops/byte).
        return {"tT": 512, "tF": 256, "vmem_limit_bytes": 56 * 1024 * 1024}
    # v5e / v6e (128 MiB VMEM): larger tiles, leave headroom below physical.
    return {"tT": 512, "tF": 512, "vmem_limit_bytes": 100 * 1024 * 1024}


def prepare_dbrx_expert_weights(w1, v1, w2, *, ffn_chunk=None,
                                compute_dtype=jnp.bfloat16):
    """One-time weight layout prep (hoisted out of the per-call forward path).

    w1, v1, w2: (E, F, H).  w2 is applied as inter @ w2[e], matching the PyTorch
    module (which stores w2_chunked[e].t() as the Linear weight).
    Returns:
      wgu: (E, nF, 2, H, tF)  stacked gate/up projection chunks (one DMA stream)
      w2c: (E, nF, tF, H)     down projection chunks
    """
    E, F, H = w1.shape
    if ffn_chunk is None:
        ffn_chunk = _tile_config()["tF"]
    tF = F if F <= ffn_chunk else ffn_chunk
    F_pad = _round_up(F, tF)
    nF = F_pad // tF

    def chunk_up(w):                                   # (E, F, H) -> (E, nF, H, tF)
        wt = jnp.transpose(w, (0, 2, 1)).astype(compute_dtype)       # (E, H, F)
        if F_pad != F:
            wt = jnp.pad(wt, ((0, 0), (0, 0), (0, F_pad - F)))
        return wt.reshape(E, H, nF, tF).transpose(0, 2, 1, 3)

    wgu = jnp.stack([chunk_up(w1), chunk_up(v1)], axis=2)            # (E,nF,2,H,tF)

    w2c = w2.astype(compute_dtype)                                    # (E, F, H)
    if F_pad != F:
        w2c = jnp.pad(w2c, ((0, 0), (0, F_pad - F), (0, 0)))
    w2c = w2c.reshape(E, nF, tF, H)
    return wgu, w2c


def _build_routing(top_experts, top_weights, num_experts, tile_tokens, num_tiles):
    """Sort (token, top-k slot) assignments by expert and pad each expert group
    to a multiple of the token tile.  Returns per-row gather indices / routing
    weights plus the scalar-prefetch tables used by the kernel."""
    E, tT = num_experts, tile_tokens
    K = top_experts.shape[-1]
    A = top_experts.shape[0] * K
    L_pad = num_tiles * tT

    expert_flat = top_experts.reshape(-1).astype(jnp.int32)           # (A,)
    weight_flat = top_weights.reshape(-1).astype(jnp.float32)         # (A,)
    token_flat = jnp.arange(A, dtype=jnp.int32) // K                  # (A,)

    counts = jnp.zeros((E,), jnp.int32).at[expert_flat].add(1)        # (E,)
    tiles_per_e = (counts + tT - 1) // tT                             # (E,)
    tiles_cum = jnp.cumsum(tiles_per_e)                               # (E,)
    num_real = tiles_cum[-1]                                          # scalar

    zero = jnp.zeros((1,), jnp.int32)
    pad_start = jnp.concatenate([zero, jnp.cumsum(tiles_per_e * tT)[:-1]])
    group_start = jnp.concatenate([zero, jnp.cumsum(counts)[:-1]])

    order = jnp.argsort(expert_flat)                                  # stable
    sorted_e = expert_flat[order]
    rank = jnp.arange(A, dtype=jnp.int32) - group_start[sorted_e]
    dest = pad_start[sorted_e] + rank                                 # (A,) unique

    row_token = jnp.zeros((L_pad,), jnp.int32).at[dest].set(token_flat[order])
    row_weight = jnp.zeros((L_pad,), jnp.float32).at[dest].set(weight_flat[order])

    m_idx = jnp.arange(num_tiles, dtype=jnp.int32)
    te_raw = jnp.searchsorted(tiles_cum, m_idx, side="right").astype(jnp.int32)
    e_last = jnp.searchsorted(tiles_cum, num_real - 1, side="right").astype(jnp.int32)
    # Invalid trailing tiles alias the last real tile's expert so their weight
    # DMAs are skipped (the index_map also pins their ffn-chunk index).
    tile_expert = jnp.where(m_idx < num_real,
                            jnp.minimum(te_raw, E - 1), e_last).astype(jnp.int32)
    return row_token, row_weight, tile_expert, tiles_cum[-1:]


def _grouped_glu_kernel(tile_expert_ref, num_real_ref, x_ref, wgu_ref, w2_ref,
                        out_ref, acc_ref):
    # tile_expert_ref: (NT,) int32 SMEM  (consumed only by the index_maps)
    # num_real_ref:    (1,)  int32 SMEM  number of real (non-padding) tiles
    # x_ref:   (tT, H)          gathered token rows (sorted by expert)
    # wgu_ref: (1, 1, 2, H, tF) stacked w1/v1 chunk of this tile's expert
    # w2_ref:  (1, 1, tF, H)    w2 chunk of this tile's expert
    # out_ref: (tT, H)          per-assignment GLU output (routing wt applied later)
    # acc_ref: (tT, H) f32      resident accumulator over ffn chunks
    del tile_expert_ref
    f = pl.program_id(1)

    @pl.when(f == 0)
    def _init():
        acc_ref[...] = jnp.zeros_like(acc_ref)

    @pl.when(pl.program_id(0) < num_real_ref[0])
    def _compute():
        x = x_ref[...]                                                     # (tT, H)
        gate = jnp.dot(x, wgu_ref[0, 0, 0], preferred_element_type=jnp.float32)
        up = jnp.dot(x, wgu_ref[0, 0, 1], preferred_element_type=jnp.float32)
        inter = (gate * jax.nn.sigmoid(gate) * up).astype(x.dtype)         # SiLU * up
        acc_ref[...] += jnp.dot(inter, w2_ref[0, 0],
                                preferred_element_type=jnp.float32)

    @pl.when(f == pl.num_programs(1) - 1)
    def _finalize():
        out_ref[...] = acc_ref[...].astype(out_ref.dtype)


def dbrx_experts_forward(x, top_weights, top_experts, prepared_weights,
                         compute_dtype=jnp.bfloat16):
    """x: (B, S, H); top_weights/top_experts: (T, K); prepared_weights from
    prepare_dbrx_expert_weights().  The full router-probs `weights` arg of the
    PyTorch forward is unused there and therefore omitted."""
    wgu, w2c = prepared_weights
    E, nF, _, H, tF = wgu.shape
    B, S, Hx = x.shape
    assert Hx == H
    T = B * S
    K = top_experts.shape[-1]
    A = T * K

    cfg = _tile_config()
    tT = min(cfg["tT"], _round_up(A, 8))
    NT = A // tT + E          # static upper bound on sum_e ceil(count_e / tT)
    L_pad = NT * tT
    F_pad = nF * tF

    row_token, row_weight, tile_expert, num_real = _build_routing(
        top_experts, top_weights, E, tT, NT)

    # Gather (and duplicate) token rows into expert-sorted order; cast once.
    x_rows = x.reshape(T, H)[row_token].astype(compute_dtype)          # (L_pad, H)

    # index_maps: per-tile expert comes from the scalar-prefetched table; invalid
    # trailing tiles keep the previous step's block index so their DMAs are elided.
    def x_map(m, f, te, nr):
        return (jnp.where(m < nr[0], m, nr[0] - 1), 0)

    def wgu_map(m, f, te, nr):
        return (te[m], jnp.where(m < nr[0], f, nF - 1), 0, 0, 0)

    def w2_map(m, f, te, nr):
        return (te[m], jnp.where(m < nr[0], f, nF - 1), 0, 0)

    def out_map(m, f, te, nr):
        return (m, 0)

    bytes_w = int(wgu.size * wgu.dtype.itemsize + w2c.size * w2c.dtype.itemsize)
    cost = pl.CostEstimate(
        flops=int(6 * L_pad * H * F_pad),
        transcendentals=int(L_pad * F_pad),
        bytes_accessed=int(bytes_w + 2 * L_pad * H * x_rows.dtype.itemsize),
    )

    y = pl.pallas_call(
        _grouped_glu_kernel,
        out_shape=jax.ShapeDtypeStruct((L_pad, H), x.dtype),
        grid_spec=pltpu.PrefetchScalarGridSpec(
            num_scalar_prefetch=2,
            grid=(NT, nF),
            in_specs=[
                pl.BlockSpec((tT, H), x_map),
                pl.BlockSpec((1, 1, 2, H, tF), wgu_map),
                pl.BlockSpec((1, 1, tF, H), w2_map),
            ],
            out_specs=pl.BlockSpec((tT, H), out_map),
            scratch_shapes=[pltpu.VMEM((tT, H), jnp.float32)],
        ),
        compiler_params=pltpu.CompilerParams(
            dimension_semantics=("parallel", "arbitrary"),
            vmem_limit_bytes=cfg["vmem_limit_bytes"]),
        cost_estimate=cost,
    )(tile_expert, num_real, x_rows, wgu, w2c)                          # (L_pad, H)

    # Apply top-k routing weights and scatter-add back to tokens (duplicate token
    # indices accumulate; padding rows carry weight 0).  This is the XLA-side
    # equivalent of the reference's index_add_.
    out = jnp.zeros((T, H), jnp.float32).at[row_token].add(
        y.astype(jnp.float32) * row_weight[:, None])
    return out.astype(x.dtype).reshape(B, S, H)


def _reference_forward(x, top_weights, top_experts, w1, v1, w2):
    B, S, H = x.shape
    E = w1.shape[0]
    xf = x.reshape(-1, H).astype(jnp.float32)
    out = jnp.zeros_like(xf)
    for e in range(E):
        gate = jax.nn.silu(xf @ w1[e].T)
        up = xf @ v1[e].T
        y = (gate * up) @ w2[e]
        w_e = jnp.sum(top_weights * (top_experts == e).astype(jnp.float32), axis=1)
        out = out + y * w_e[:, None]
    return out.reshape(B, S, H)


if __name__ == "__main__":
    # Small synthetic shapes consistent with the module's forward.
    bsz, q_len, hidden_size, ffn_hidden_size = 2, 8, 32, 64
    moe_num_experts, top_k = 4, 2
    T = bsz * q_len

    key = jax.random.PRNGKey(0)
    kx, kw1, kv1, kw2, ktw, kte = jax.random.split(key, 6)

    x = jax.random.normal(kx, (bsz, q_len, hidden_size), dtype=jnp.float32)
    w1 = jax.random.normal(kw1, (moe_num_experts, ffn_hidden_size, hidden_size),
                           dtype=jnp.float32) * 0.1
    v1 = jax.random.normal(kv1, (moe_num_experts, ffn_hidden_size, hidden_size),
                           dtype=jnp.float32) * 0.1
    w2 = jax.random.normal(kw2, (moe_num_experts, ffn_hidden_size, hidden_size),
                           dtype=jnp.float32) * 0.1

    top_weights = jax.nn.softmax(
        jax.random.normal(ktw, (T, top_k), dtype=jnp.float32), axis=-1)
    top_experts = jax.random.randint(kte, (T, top_k), 0, moe_num_experts,
                                     dtype=jnp.int32)

    # One-time weight prep (in a real model this happens at load time).
    prepared = prepare_dbrx_expert_weights(w1, v1, w2)

    fwd = jax.jit(dbrx_experts_forward)
    out = jax.block_until_ready(fwd(x, top_weights, top_experts, prepared))

    ref = _reference_forward(x, top_weights, top_experts, w1, v1, w2)
    assert out.shape == (bsz, q_len, hidden_size)
    # bf16 MXU compute vs f32 reference -> loose but still discriminating tolerance.
    assert jnp.allclose(out, ref, atol=5e-2, rtol=5e-2), (
        float(jnp.max(jnp.abs(out - ref))))

    print("KERNEL_OK")
</pallas_src>

<mosaic_0001>
module attributes {stable_mosaic.version = 11 : i64} {
  func.func private @main(%arg0: i32) attributes {dimension_semantics = [#tpu.dimension_semantics<core_parallel>], iteration_bounds = array<i64: 2>, tpu.core_type = #tpu.core_type<sc_scalar_subcore>, window_params = []} {
    return
  }
}

module attributes {stable_mosaic.version = 11 : i64} {
  func.func private @main(%arg0: i32) attributes {dimension_semantics = [#tpu.dimension_semantics<core_parallel>], iteration_bounds = array<i64: 2>, tpu.core_type = #tpu.core_type<sc_scalar_subcore>, window_params = []} {
    return
  }
}

module attributes {stable_mosaic.version = 11 : i64} {
  func.func @_grouped_glu_kernel(%arg0: i32, %arg1: i32, %arg2: memref<5xi32, #tpu.memory_space<smem>>, %arg3: memref<1xi32, #tpu.memory_space<smem>>, %arg4: memref<32x32xbf16, #tpu.memory_space<vmem>>, %arg5: memref<1x1x2x32x64xbf16, #tpu.memory_space<vmem>>, %arg6: memref<1x1x64x32xbf16, #tpu.memory_space<vmem>>, %arg7: memref<32x32xf32, #tpu.memory_space<vmem>>, %arg8: memref<32x32xf32, #tpu.memory_space<vmem>>) attributes {dimension_semantics = [#tpu.dimension_semantics<parallel>, #tpu.dimension_semantics<arbitrary>], iteration_bounds = array<i64: 5, 1>, scalar_prefetch = 2 : i64, scratch_operands = 1 : i64, tpu.core_type = #tpu.core_type<tc>, window_params = [{transform_indices = @transform_0, window_bounds = array<i64: 32, 32>}, {transform_indices = @transform_1, window_bounds = array<i64: 1, 1, 2, 32, 64>}, {transform_indices = @transform_2, window_bounds = array<i64: 1, 1, 64, 32>}, {transform_indices = @transform_3, window_bounds = array<i64: 32, 32>}]} {
    %c0_i32 = arith.constant 0 : i32
    %0 = arith.cmpi eq, %arg1, %c0_i32 : i32
    %1 = arith.extui %0 : i1 to i32
    %c0_i32_0 = arith.constant 0 : i32
    %2 = arith.cmpi ne, %1, %c0_i32_0 : i32
    scf.if %2 {
      %cst = arith.constant 0.000000e+00 : f32
      %10 = vector.broadcast %cst : f32 to vector<32x32xf32>
      %c0_4 = arith.constant 0 : index
      %c0_5 = arith.constant 0 : index
      %11 = vector.load %arg8[%c0_4, %c0_5] : memref<32x32xf32, #tpu.memory_space<vmem>>, vector<32x32xf32>
      tpu.vector_store %arg8[%c0_4, %c0_5], %10 {strides = array<i32>} : memref<32x32xf32, #tpu.memory_space<vmem>>, vector<32x32xf32>,
    } else {
    }
    %c0 = arith.constant 0 : index
    %3 = memref.load %arg3[%c0] : memref<1xi32, #tpu.memory_space<smem>>
    %4 = arith.cmpi slt, %arg0, %3 : i32
    %5 = arith.extui %4 : i1 to i32
    %c0_i32_1 = arith.constant 0 : i32
    %6 = arith.cmpi ne, %5, %c0_i32_1 : i32
    scf.if %6 {
      %c0_4 = arith.constant 0 : index
      %c0_5 = arith.constant 0 : index
      %10 = vector.load %arg4[%c0_4, %c0_5] : memref<32x32xbf16, #tpu.memory_space<vmem>>, vector<32x32xbf16>
      %c0_6 = arith.constant 0 : index
      %c0_7 = arith.constant 0 : index
      %c0_8 = arith.constant 0 : index
      %c0_9 = arith.constant 0 : index
      %c0_10 = arith.constant 0 : index
      %11 = vector.load %arg5[%c0_6, %c0_7, %c0_8, %c0_9, %c0_10] : memref<1x1x2x32x64xbf16, #tpu.memory_space<vmem>>, vector<1x1x1x32x64xbf16>
      %12 = vector.shape_cast %11 : vector<1x1x1x32x64xbf16> to vector<32x64xbf16>
      %cst = arith.constant dense<0.000000e+00> : vector<32x64xf32>
      %13 = tpu.matmul %10, %12, %cst {dimension_numbers = #tpu.dot_dimension_numbers<[1], [0], [0], [1], [0, 0, 1, 1], [], []>} : vector<32x32xbf16>, vector<32x64xbf16>, vector<32x64xf32> -> vector<32x64xf32>
      %c0_11 = arith.constant 0 : index
      %c0_12 = arith.constant 0 : index
      %c1 = arith.constant 1 : index
      %c0_13 = arith.constant 0 : index
      %c0_14 = arith.constant 0 : index
      %14 = vector.load %arg5[%c0_11, %c0_12, %c1, %c0_13, %c0_14] : memref<1x1x2x32x64xbf16, #tpu.memory_space<vmem>>, vector<1x1x1x32x64xbf16>
      %15 = vector.shape_cast %14 : vector<1x1x1x32x64xbf16> to vector<32x64xbf16>
      %cst_15 = arith.constant dense<0.000000e+00> : vector<32x64xf32>
      %16 = tpu.matmul %10, %15, %cst_15 {dimension_numbers = #tpu.dot_dimension_numbers<[1], [0], [0], [1], [0, 0, 1, 1], [], []>} : vector<32x32xbf16>, vector<32x64xbf16>, vector<32x64xf32> -> vector<32x64xf32>
      %17 = arith.negf %13 : vector<32x64xf32>
      %18 = math.exp %17 : vector<32x64xf32>
      %cst_16 = arith.constant 1.000000e+00 : f32
      %19 = vector.broadcast %cst_16 : f32 to vector<32x64xf32>
      %20 = arith.addf %19, %18 : vector<32x64xf32>
      %21 = arith.divf %19, %20 : vector<32x64xf32>
      %22 = arith.mulf %13, %21 : vector<32x64xf32>
      %23 = arith.mulf %22, %16 : vector<32x64xf32>
      %24 = arith.truncf %23 : vector<32x64xf32> to vector<32x64xbf16>
      %c0_17 = arith.constant 0 : index
      %c0_18 = arith.constant 0 : index
      %25 = vector.load %arg8[%c0_17, %c0_18] : memref<32x32xf32, #tpu.memory_space<vmem>>, vector<32x32xf32>
      %c0_19 = arith.constant 0 : index
      %c0_20 = arith.constant 0 : index
      %c0_21 = arith.constant 0 : index
      %c0_22 = arith.constant 0 : index
      %26 = vector.load %arg6[%c0_19, %c0_20, %c0_21, %c0_22] : memref<1x1x64x32xbf16, #tpu.memory_space<vmem>>, vector<1x1x64x32xbf16>
      %27 = vector.shape_cast %26 : vector<1x1x64x32xbf16> to vector<64x32xbf16>
      %cst_23 = arith.constant dense<0.000000e+00> : vector<32x32xf32>
      %28 = tpu.matmul %24, %27, %cst_23 {dimension_numbers = #tpu.dot_dimension_numbers<[1], [0], [0], [1], [0, 0, 1, 1], [], []>} : vector<32x64xbf16>, vector<64x32xbf16>, vector<32x32xf32> -> vector<32x32xf32>
      %29 = arith.addf %25, %28 : vector<32x32xf32>
      %c0_24 = arith.constant 0 : index
      %c0_25 = arith.constant 0 : index
      %30 = vector.load %arg8[%c0_24, %c0_25] : memref<32x32xf32, #tpu.memory_space<vmem>>, vector<32x32xf32>
      tpu.vector_store %arg8[%c0_24, %c0_25], %29 {strides = array<i32>} : memref<32x32xf32, #tpu.memory_space<vmem>>, vector<32x32xf32>,
    } else {
    }
    %c0_i32_2 = arith.constant 0 : i32
    %7 = arith.cmpi eq, %arg1, %c0_i32_2 : i32
    %8 = arith.extui %7 : i1 to i32
    %c0_i32_3 = arith.constant 0 : i32
    %9 = arith.cmpi ne, %8, %c0_i32_3 : i32
    scf.if %9 {
      %c0_4 = arith.constant 0 : index
      %c0_5 = arith.constant 0 : index
      %10 = vector.load %arg8[%c0_4, %c0_5] : memref<32x32xf32, #tpu.memory_space<vmem>>, vector<32x32xf32>
      %c0_6 = arith.constant 0 : index
      %c0_7 = arith.constant 0 : index
      %11 = vector.load %arg7[%c0_6, %c0_7] : memref<32x32xf32, #tpu.memory_space<vmem>>, vector<32x32xf32>
      tpu.vector_store %arg7[%c0_6, %c0_7], %10 {strides = array<i32>} : memref<32x32xf32, #tpu.memory_space<vmem>>, vector<32x32xf32>,
    } else {
    }
    return
  }
  func.func @transform_0(%arg0: i32, %arg1: i32, %arg2: memref<5xi32, #tpu.memory_space<smem>>, %arg3: memref<1xi32, #tpu.memory_space<smem>>) -> (i32, i32) {
    %c0 = arith.constant 0 : index
    %0 = memref.load %arg3[%c0] : memref<1xi32, #tpu.memory_space<smem>>
    %1 = arith.cmpi slt, %arg0, %0 : i32
    %c0_0 = arith.constant 0 : index
    %2 = memref.load %arg3[%c0_0] : memref<1xi32, #tpu.memory_space<smem>>
    %c1_i32 = arith.constant 1 : i32
    %3 = arith.subi %2, %c1_i32 : i32
    %4 = arith.select %1, %arg0, %3 : i32
    %c0_i32 = arith.constant 0 : i32
    %c0_i32_1 = arith.constant 0 : i32
    return %4, %c0_i32 : i32, i32
  }
  func.func @transform_1(%arg0: i32, %arg1: i32, %arg2: memref<5xi32, #tpu.memory_space<smem>>, %arg3: memref<1xi32, #tpu.memory_space<smem>>) -> (i32, i32, i32, i32, i32) {
    %0 = arith.index_cast %arg0 : i32 to index
    %1 = memref.load %arg2[%0] : memref<5xi32, #tpu.memory_space<smem>>
    %c0 = arith.constant 0 : index
    %2 = memref.load %arg3[%c0] : memref<1xi32, #tpu.memory_space<smem>>
    %3 = arith.cmpi slt, %arg0, %2 : i32
    %c0_i32 = arith.constant 0 : i32
    %4 = arith.select %3, %arg1, %c0_i32 : i32
    %c0_i32_0 = arith.constant 0 : i32
    %c0_i32_1 = arith.constant 0 : i32
    %c0_i32_2 = arith.constant 0 : i32
    %c0_i32_3 = arith.constant 0 : i32
    return %1, %4, %c0_i32_0, %c0_i32_1, %c0_i32_2 : i32, i32, i32, i32, i32
  }
  func.func @transform_2(%arg0: i32, %arg1: i32, %arg2: memref<5xi32, #tpu.memory_space<smem>>, %arg3: memref<1xi32, #tpu.memory_space<smem>>) -> (i32, i32, i32, i32) {
    %0 = arith.index_cast %arg0 : i32 to index
    %1 = memref.load %arg2[%0] : memref<5xi32, #tpu.memory_space<smem>>
    %c0 = arith.constant 0 : index
    %2 = memref.load %arg3[%c0] : memref<1xi32, #tpu.memory_space<smem>>
    %3 = arith.cmpi slt, %arg0, %2 : i32
    %c0_i32 = arith.constant 0 : i32
    %4 = arith.select %3, %arg1, %c0_i32 : i32
    %c0_i32_0 = arith.constant 0 : i32
    %c0_i32_1 = arith.constant 0 : i32
    %c0_i32_2 = arith.constant 0 : i32
    return %1, %4, %c0_i32_0, %c0_i32_1 : i32, i32, i32, i32
  }
  func.func @transform_3(%arg0: i32, %arg1: i32, %arg2: memref<5xi32, #tpu.memory_space<smem>>, %arg3: memref<1xi32, #tpu.memory_space<smem>>) -> (i32, i32) {
    %c0_i32 = arith.constant 0 : i32
    %c0_i32_0 = arith.constant 0 : i32
    return %arg0, %c0_i32 : i32, i32
  }
}

</mosaic_0001>

<bundles_post_ra>
// kernel: custom-call.1
= control target key start
LH: loop header
LB: loop body
LE: loop exit
PB: predicated region body
PF: predicated region fallthrough
CT: control target
= control target key end

     0   :  { %s6_s0 = inlined_call_operand.vmem [shape: u32[5], index: 0, kind: output, shape index: {}]  }

// kernel: dbrx_experts_forward.1
= control target key start
LH: loop header
LB: loop body
LE: loop exit
PB: predicated region body
PF: predicated region fallthrough
CT: control target
= control target key end

     0   :  { %s1883_s0 = inlined_call_operand.hbm [shape: s32[5], index: 0, kind: input, shape index: {}]   ;;  %s1884_s1 = inlined_call_operand.<no memory space> [shape: s32[1], index: 1, kind: input, shape index: {}]   ;;  %s1885_s2 = inlined_call_operand.hbm [shape: bf16[160,32], index: 2, kind: input, shape index: {}]   ;;  %s1886_s3 = inlined_call_operand.hbm [shape: bf16[4,1,2,32,64], index: 3, kind: input, shape index: {}]   ;;  %s1887_s4 = inlined_call_operand.hbm [shape: bf16[4,1,64,32], index: 4, kind: input, shape index: {}]   ;;  %s1888_s5 = inlined_call_operand.hbm [shape: f32[160,32], index: 5, kind: output, shape index: {}]  }
   0x1   :  { %1909 = sst [smem:[#allocation31_spill]] %s1885_s2  ;;  %s1081_s20 = scalar_lea.hbm %s1883_s0, 16 }
   0x2   :  { %1910 = sst [smem:[#allocation32_spill]] %s1886_s3  ;;  %p1082_p0 = scmp.ne.s32.totalorder %s1883_s0, %s1081_s20 }
   0x3   :  { %1911 = sst [smem:[#allocation33_spill]] %s1888_s5  ;;  %p1085_p1 = scmp.lt.u32.totalorder %s1081_s20, %s1883_s0 }
   0x5   :  { %p1087_p2 = pnand %p1085_p1, %p1082_p0 }
   0x7   :  { %1090 = shalt.err (!%p1087_p2)  }
   0x8   :  { %s1347_s25 = smov [#allocation4]   ;;  %12 = sst [smem:[#allocation5]] %s1884_s1 }
   0x9   :  { %11 = dma.hbm_to_smem %s1883_s0, 16, %s1347_s25, [#allocation3] }
   0xa   :  { %1269 = dma.done.wait [#allocation3], 16 }
   0xb   :  { %1270 = vsyncadd [#allocation3], 4294967280 }
   0xc   :  { %14 = sfence }
   0xd   :  { %15 = vsyncpa [#allocation7], 0 }
   0xe   :  { %17 = vsyncpa [#allocation7 + $0x1], 0 }
   0xf   :  { %18 = vsyncpa [#allocation10], 0 }
  0x10   :  { %20 = vsyncpa [#allocation10 + $0x1], 0 }
  0x11   :  { %21 = vsyncpa [#allocation8], 0 }
  0x12   :  { %23 = vsyncpa [#allocation8 + $0x1], 0  ;;  %s1402_s30 = smov 0   ;;  %s1404_s6 = smov 0  }
  0x13   :  { %s1406_s7 = smov 0   ;;  %s1408_s0 = smov 0  }
  0x14   :  { %s1410_s8 = smov 0   ;;  %s1412_s1 = smov 0  }
  0x15   :  { %s1414_s9 = smov 0   ;;  %s1416_s10 = smov 0  }
  0x16   :  { %s1418_s11 = smov 0   ;;  %s1420_s12 = smov 0  }
  0x17   :  { %s1422_s13 = smov 0   ;;  %s1424_s14 = smov 0  }
  0x18   :  { %s1426_s15 = smov 0   ;;  %s1428_s16 = smov 0  }
  0x19   :  { %s1430_s17 = smov 0  }
  0x1a LB: > { %1912 = sst [smem:[#allocation22_spill]] %s1289_s30  ;;  %s1476_s18 = sadd.s32 4294967295, %s1345_s17   ;;  %s1345_s17 = sphi %s1430_s17, %s29_s17   ;;  %s1341_s16 = sphi %s1428_s16, %s1974_s16   ;;  %s1337_s15 = sphi %s1426_s15, %s1973_s15   ;;  %s1333_s14 = sphi %s1424_s14, %s1972_s14   ;;  %s1329_s13 = sphi %s1422_s13, %s1971_s13   ;;  %s1325_s12 = sphi %s1420_s12, %s1970_s12   ;;  %s1321_s11 = sphi %s1418_s11, %s1962_s11   ;;  %s1317_s10 = sphi %s1416_s10, %s1969_s10   ;;  %s1313_s9 = sphi %s1414_s9, %s1968_s9   ;;  %s1309_s1 = sphi %s1412_s1, %s1967_s1   ;;  %s1305_s8 = sphi %s1410_s8, %s1966_s8   ;;  %s1301_s0 = sphi %s1408_s0, %s1965_s0   ;;  %s1297_s7 = sphi %s1406_s7, %s1964_s7   ;;  %s1293_s6 = sphi %s1404_s6, %s1959_s6   ;;  %s1289_s30 = sphi %s1402_s30, %s1958_s30  }
  0x1b   : > { %1913 = sst [smem:[#allocation23_spill]] %s1293_s6  ;;  %s801_s19 = sadd.s32 4294967294, %s1345_s17  }
  0x1c   : > { %1914 = sst [smem:[#allocation24_spill]] %s1297_s7  ;;  %s41_s20 = sadd.s32 1, %s1341_s16 }
  0x1d   : > { %1915 = sst [smem:[#allocation25_spill]] %s1321_s11  ;;  %p1897_p3 = scmp.eq.s32.totalorder %s1345_s17, 0 }
  0x1e   : > { %1916 = sst [smem:[#allocation26_spill]] %s1337_s15  ;;  %p43_p4 = scmp.ge.s32.totalorder %s41_s20, 5 }
  0x1f   : > { %p1896_p5 = scmp.eq.s32.totalorder %s1476_s18, 0  ;;  %s79_s21 = sld [smem:[#allocation4 + %s1341_s16]] }
  0x20   : > { %s92_s22 = sadd.s32 1, %s1321_s11  ;;  %s1976_s20 = smov (%p43_p4, %s41_s20), 0 }
  0x21   : > { %p99_p6 = scmp.ne.s32.totalorder %s1321_s11, %s1317_s10  ;;  %p105_p7 = scmp.ne.s32.totalorder %s1317_s10, %s1313_s9 }
  0x22   : > { %s83_s23 = sld [smem:[#allocation4 + %s1976_s20]]  ;;  %s151_s24 = ssub.s32 %s1341_s16, %s1976_s20 }
  0x23   : > { %p1494_p8 = por %p99_p6, %p1897_p3  ;;  %p1500_p9 = por %p105_p7, %p1896_p5 }
  0x24   : > { %p152_p10 = scmp.eq.s32.totalorder %s151_s24, 0  ;;  %s154_s27 = sadd.s32 1, %s1297_s7 }
  0x25   : > { %s1918_s26 = scalar_select %p1500_p9, 1, 0 }
  0x26   : > { %p164_p11 = scmp.ne.s32.totalorder %s1297_s7, %s1293_s6  ;;  %p165_p12 = scmp.eq.s32.totalorder %s1476_s18, 4 }
  0x27   : > { %s1509_s28 = scalar_select %p152_p10, %s1297_s7, %s154_s27  }
  0x28   : > { %p1511_p13 = por %p165_p12, %p164_p11  ;;  %p170_p0 = scmp.ne.s32.totalorder %s1293_s6, %s1289_s30 }
  0x29   : > { %1919 = sst [smem:[#allocation27_spill]] %s1509_s28  ;;  %s87_s9 = ssub.s32 %s79_s21, %s83_s23 }
  0x2a   : > { %s1920_s29 = scalar_select %p1511_p13, 1, 0 }
  0x2b   : > { %p171_p1 = scmp.eq.s32.totalorder %s801_s19, 4  ;;  %p90_p2 = scmp.eq.s32.totalorder %s87_s9, 0 }
  0x2c   : > { %1921 = sst [smem:[#allocation28_spill]] %s1920_s29  ;;  %p1895_p6 = scmp.lt.s32.totalorder %s1345_s17, 5 }
  0x2d   : > { %p1517_p4 = por %p171_p1, %p170_p0  ;;  %s216_s27 = sand.u32 1, %s1345_s17  }
  0x2e   : > { %s1523_s5 = scalar_select %p90_p2, %s1321_s11, %s92_s22  }
  0x2f   : > { %s1922_s24 = scalar_select %p1517_p4, 1, 0 }
  0x30   : > { %1924 = sst [smem:[#allocation30_spill]] %s1523_s5  ;;  %s218_s28 = sand.u32 1, %s1321_s11  }
  0x31   : > { %1923 = sst [smem:[#allocation29_spill]] %s1922_s24  ;;  %s810_s7 = sshll.u32 %s218_s28, 5 }
  0x32   : > { %p1531_p7 = pnand %p1895_p6, %p1494_p8  ;;  %s220_s22 = scalar_lea.vmem [#allocation9], %s810_s7 }
  0x33   : > { %s898_s19 = scalar_select %p1494_p8, [#allocation4], [#allocation13] }
  0x34   : > { %s899_s21 = scalar_select %p1494_p8, %s1341_s16, 0 }
  0x35   : > { %s1978_s19 = smov (!%p1895_p6, %s898_s19), [#allocation15]  ;;  %s233_s23 = sshll.u32 %s220_s22, 4  ;;  %s1544_s23 = int_to_ptr.vmem [resolvable:$true] %s233_s23 }
  0x36   : > { %s1980_s21 = smov (!%p1895_p6, %s899_s21), 0  ;;  %p816_p10 = scmp.ge.s32.totalorder %s1345_s17, 1 }
  0x37   : > { %s221_s9 = sld [smem:[%s1978_s19 + %s1980_s21]]  ;;  %p268_p11 = scmp.lt.s32.totalorder %s1345_s17, 6 }
  0x38   : > { %s1927_s3 = sld [smem:[#allocation32_spill]]  ;;  %s1557_s7 = sld [smem:[#allocation5]] }
  0x39   : > { %p1548_p12 = pnand %p816_p10, %p268_p11  ;;  %s1559_s19 = scalar_lea.sflag [#allocation10], %s216_s27 }
  0x3a   : > { %p1093_p0 = pneg %p1531_p7 }
  0x3d   : > { %s852_s5 = sshll.u32 %s221_s9, 9 }
  0x3e   : > { %s1555_s24 = scalar_lea.hbm %s1927_s3, %s852_s5  ;;  %s1096_s5 = scalar_lea.hbm %s1927_s3, 2048 }
  0x3f   : > { %s1091_s21 = scalar_lea.hbm %s1555_s24, 512  ;;  %p1097_p10 = scmp.lt.u32.totalorder %s1555_s24, %s1927_s3 }
  0x40   : > { %p1092_p8 = scmp.ne.s32.totalorder %s1555_s24, %s1091_s21  ;;  %p1098_p11 = scmp.lt.u32.totalorder %s1096_s5, %s1091_s21 }
  0x41   : > { %p1100_p5 = scmp.lt.u32.totalorder %s1091_s21, %s1555_s24 }
  0x42   : > { %p1094_p1 = pnand %p1093_p0, %p1092_p8  ;;  %p1099_p6 = por %p1098_p11, %p1097_p10 }
  0x44   : > { %p1095_p2 = pneg %p1094_p1  ;;  %p1101_p3 = por %p1100_p5, %p1099_p6 }
  0x46   : > { %p1102_p4 = pnand %p1101_p3, %p1095_p2 }
  0x48   : > { %1105 = shalt.err (!%p1102_p4)
}
  0x49   : > { %s1106_s27 = scalar_lea.vmem %s1544_s23, 512  ;;  %s1348_s22 = smov [#allocation9]  }
  0x4a   : > { %p1107_p8 = scmp.ne.s32.totalorder %s1544_s23, %s1106_s27  ;;  %s1111_s11 = sshll.u32 %s1348_s22, 4  ;;  %s1112_s11 = int_to_ptr.vmem [resolvable:$false] %s1111_s11 }
  0x4b   : > { %s1113_s9 = scalar_lea.vmem %s1112_s11, 1024  ;;  %p1114_p9 = scmp.lt.s32.totalorder %s1544_s23, %s1112_s11 }
  0x4c   : > { %p1109_p1 = pnand %p1107_p8, %p1093_p0  ;;  %p1115_p10 = scmp.lt.s32.totalorder %s1113_s9, %s1106_s27 }
  0x4e   : > { %p1110_p13 = pneg %p1109_p1  ;;  %p1116_p11 = por %p1115_p10, %p1114_p9 }
  0x50   : > { %p1117_p5 = pnand %p1116_p11, %p1110_p13 }
  0x52   : > { %1120 = shalt.err (!%p1117_p5)
}
  0x53   : > { %s1900_s21 = smov 64   ;;  %s1902_s5 = smov 4  }
  0x54   : > { %917 = dma.hbm_to_vmem [thread:$0]  (!%p1531_p7), %s1555_s24, 512, %s1544_s23, %s1559_s19, %s1900_s21, %s1900_s21, %s1902_s5  }
  0x55   : > { %s56_s25 = sadd.s32 1, %s1333_s14  ;;  %p63_p3 = scmp.ne.s32.totalorder %s1333_s14, %s1329_s13 }
  0x56   : > { %p69_p9 = scmp.ne.s32.totalorder %s1329_s13, %s1325_s12  ;;  %s191_s27 = sand.u32 1, %s1333_s14  }
  0x57   : > { %p1928_p13 = scmp.eq.s32.totalorder %s1345_s17, 0  ;;  %p1930_p6 = scmp.eq.s32.totalorder %s1476_s18, 0 }
  0x58   : > { %s806_s29 = sshll.u32 %s191_s27, 4  ;;  %p46_p2 = scmp.lt.s32.totalorder %s1341_s16, %s1557_s7 }
  0x59   : > { %p1598_p4 = por %p1928_p13, %p63_p3  ;;  %p1604_p0 = por %p1930_p6, %p69_p9 }
  0x5a   : > { %s802_s24 = sadd.s32 4294967295, %s1557_s7  ;;  %p50_p7 = scmp.lt.s32.totalorder %s1976_s20, %s1557_s7 }
  0x5b   : > { %s1931_s11 = scalar_select %p1604_p0, 1, 0 }
  0x5c   : > { %s48_s23 = scalar_select %p46_p2, %s1341_s16, %s802_s24 }
  0x5d   : > { %s52_s12 = scalar_select %p50_p7, %s1976_s20, %s802_s24 }
  0x5e   : > { %s851_s9 = sshll.u32 %s48_s23, 8  ;;  %s195_s21 = scalar_lea.vmem [#allocation6], %s806_s29 }
  0x5f   : > { %s206_s5 = sshll.u32 %s195_s21, 4  ;;  %s53_s3 = ssub.s32 %s48_s23, %s52_s12  ;;  %s1620_s5 = int_to_ptr.vmem [resolvable:$true] %s206_s5 }
  0x60   : > { %s1932_s2 = sld [smem:[#allocation31_spill]]  ;;  %p54_p8 = scmp.eq.s32.totalorder %s53_s3, 0 }
  0x61   : > { %p1933_p1 = scmp.lt.s32.totalorder %s1345_s17, 5  ;;  %s1633_s30 = scalar_lea.sflag [#allocation7], %s191_s27 }
  0x62   : > { %s1631_s21 = scalar_select %p54_p8, %s1333_s14, %s56_s25  }
  0x63   : > { %p1626_p10 = pnand %p1933_p1, %p1598_p4 }
  0x65   : > { %p1123_p5 = pneg %p1626_p10 }
  0x66   : > { %s1618_s6 = scalar_lea.hbm %s1932_s2, %s851_s9  ;;  %s1126_s29 = scalar_lea.hbm %s1932_s2, 1280 }
  0x67   : > { %s1121_s15 = scalar_lea.hbm %s1618_s6, 256  ;;  %p1127_p13 = scmp.lt.u32.totalorder %s1618_s6, %s1932_s2 }
  0x68   : > { %p1122_p11 = scmp.ne.s32.totalorder %s1618_s6, %s1121_s15  ;;  %p1128_p4 = scmp.lt.u32.totalorder %s1126_s29, %s1121_s15 }
  0x69   : > { %p1130_p2 = scmp.lt.u32.totalorder %s1121_s15, %s1618_s6 }
  0x6a   : > { %p1124_p3 = pnand %p1123_p5, %p1122_p11  ;;  %p1129_p6 = por %p1128_p4, %p1127_p13 }
  0x6c   : > { %p1125_p9 = pneg %p1124_p3  ;;  %p1131_p7 = por %p1130_p2, %p1129_p6 }
  0x6e   : > { %p1132_p8 = pnand %p1131_p7, %p1125_p9 }
  0x70   : > { %1135 = shalt.err (!%p1132_p8)
}
  0x71   : > { %s1136_s25 = scalar_lea.vmem %s1620_s5, 256  ;;  %s1351_s27 = smov [#allocation6]  }
  0x72   : > { %p1137_p1 = scmp.ne.s32.totalorder %s1620_s5, %s1136_s25  ;;  %s1141_s12 = sshll.u32 %s1351_s27, 4  ;;  %s1142_s12 = int_to_ptr.vmem [resolvable:$false] %s1141_s12 }
  0x73   : > { %s1143_s9 = scalar_lea.vmem %s1142_s12, 512  ;;  %p1144_p0 = scmp.lt.s32.totalorder %s1620_s5, %s1142_s12 }
  0x74   : > { %p1139_p11 = pnand %p1137_p1, %p1123_p5  ;;  %p1145_p13 = scmp.lt.s32.totalorder %s1143_s9, %s1136_s25 }
  0x76   : > { %p1140_p3 = pneg %p1139_p11  ;;  %p1146_p4 = por %p1145_p13, %p1144_p0 }
  0x78   : > { %p1147_p6 = pnand %p1146_p4, %p1140_p3 }
  0x7a   : > { %1150 = shalt.err (!%p1147_p6)
}
  0x7b   : > { %s1935_s15 = smov 4   ;;  %s1936_s3 = smov 64  }
  0x7c   : > { %912 = dma.hbm_to_vmem [thread:$0]  (!%p1626_p10), %s1618_s6, 256, %s1620_s5, %s1633_s30, %s1936_s3, %s1936_s3, %s1935_s15  }
  0x7d   : > { %s115_s7 = sld [smem:[#allocation4 + %s1341_s16]]  ;;  %p135_p0 = scmp.ne.s32.totalorder %s1309_s1, %s1305_s8 }
  0x7e   : > { %s119_s22 = sld [smem:[#allocation4 + %s1976_s20]]  ;;  %p141_p5 = scmp.ne.s32.totalorder %s1305_s8, %s1301_s0 }
  0x7f   : > { %p1937_p9 = scmp.eq.s32.totalorder %s1345_s17, 0  ;;  %p1938_p7 = scmp.eq.s32.totalorder %s1476_s18, 0 }
  0x80   : > { %s245_s24 = sand.u32 1, %s1309_s1   ;;  %s128_s27 = sadd.s32 1, %s1309_s1 }
  0x81   : > { %p137_p2 = por %p135_p0, %p1937_p9  ;;  %p1674_p8 = por %p141_p5, %p1938_p7 }
  0x82   : > { %s813_s12 = sshll.u32 %s245_s24, 5  ;;  %p1940_p10 = scmp.lt.s32.totalorder %s1345_s17, 5 }
  0x83   : > { %s1939_s29 = scalar_select %p1674_p8, 1, 0 }
  0x84   : > { %s901_s23 = scalar_select %p137_p2, [#allocation4], [#allocation14] }
  0x85   : > { %s123_s25 = ssub.s32 %s115_s7, %s119_s22  ;;  %p1941_p11 = pmov %p1940_p10 }
  0x86   : > { %p126_p1 = scmp.eq.s32.totalorder %s123_s25, 0  ;;  %s1982_s23 = smov (!%p1940_p10, %s901_s23), [#allocation16] }
  0x87   : > { %s902_s6 = scalar_select %p137_p2, %s1341_s16, 0 }
  0x88   : > { %s1682_s5 = scalar_select %p126_p1, %s1309_s1, %s128_s27  }
  0x89   : > { %s1984_s6 = smov (!%p1941_p11, %s902_s6), 0  ;;  %p1942_p3 = pmov %p1940_p10 }
  0x8a   : > { %s248_s30 = sld [smem:[%s1982_s23 + %s1984_s6]]  ;;  %s247_s9 = scalar_lea.vmem [#allocation11], %s813_s12 }
  0x8b   : > { %p1690_p13 = pnand %p1942_p3, %p137_p2  ;;  %s260_s7 = sshll.u32 %s247_s9, 4  ;;  %s1694_s7 = int_to_ptr.vmem [resolvable:$true] %s260_s7 }
  0x8c   : > { %s1156_s6 = scalar_lea.hbm %s1887_s4, 2048 }
  0x8d   : > { %p1153_p6 = pneg %p1690_p13 }
  0x90   : > { %s853_s22 = sshll.u32 %s248_s30, 9 }
  0x91   : > { %s1699_s27 = scalar_lea.hbm %s1887_s4, %s853_s22 }
  0x92   : > { %s1151_s2 = scalar_lea.hbm %s1699_s27, 512  ;;  %p1157_p9 = scmp.lt.u32.totalorder %s1699_s27, %s1887_s4 }
  0x93   : > { %p1152_p4 = scmp.ne.s32.totalorder %s1699_s27, %s1151_s2  ;;  %p1158_p2 = scmp.lt.u32.totalorder %s1156_s6, %s1151_s2 }
  0x94   : > { %p1160_p1 = scmp.lt.u32.totalorder %s1151_s2, %s1699_s27 }
  0x95   : > { %p1154_p0 = pnand %p1153_p6, %p1152_p4  ;;  %p1159_p7 = por %p1158_p2, %p1157_p9 }
  0x97   : > { %p1155_p5 = pneg %p1154_p0  ;;  %p1161_p10 = por %p1160_p1, %p1159_p7 }
  0x99   : > { %p1162_p11 = pnand %p1161_p10, %p1155_p5 }
  0x9b   : > { %1165 = shalt.err (!%p1162_p11)
}
  0x9c   : > { %s1166_s22 = scalar_lea.vmem %s1694_s7, 512  ;;  %s1352_s24 = smov [#allocation11]  }
  0x9d   : > { %p1167_p3 = scmp.ne.s32.totalorder %s1694_s7, %s1166_s22  ;;  %s1171_s25 = sshll.u32 %s1352_s24, 4  ;;  %s1172_s25 = int_to_ptr.vmem [resolvable:$false] %s1171_s25 }
  0x9e   : > { %s1173_s23 = scalar_lea.vmem %s1172_s25, 1024  ;;  %p1174_p8 = scmp.lt.s32.totalorder %s1694_s7, %s1172_s25 }
  0x9f   : > { %p1169_p4 = pnand %p1167_p3, %p1153_p6  ;;  %p1175_p9 = scmp.lt.s32.totalorder %s1173_s23, %s1166_s22 }
  0xa1   : > { %p1170_p0 = pneg %p1169_p4  ;;  %p1176_p2 = por %p1175_p9, %p1174_p8 }
  0xa3   : > { %p1177_p7 = pnand %p1176_p2, %p1170_p0 }
  0xa5   : > { %1180 = shalt.err (!%p1177_p7)
}
  0xa6   : > { %922 = dma.hbm_to_vmem [thread:$0]  (!%p1690_p13), %s1699_s27, 512, %s1694_s7, %s1559_s19, %s1936_s3, %s1936_s3, %s1935_s15  }
  0xa7   : > { %272 = sbr.rel (%p1548_p12) target bundleno = 695 (0x2b7), region = 32  ;;  %s274_s2 = sand.u32 (!%p1548_p12), 1, %s1329_s13  }
  0xa8   : > { %s1733_s12 = sshll.u32 (!%p1548_p12), %s274_s2, 4  ;;  %s275_s6 = scalar_lea.sflag (!%p1548_p12), [#allocation7], %s274_s2 }
  0xa9   : > { %s278_s30 = scalar_lea.vmem (!%p1548_p12), [#allocation6], %s1733_s12  ;;  %p1944_p8 = scmp.ne.s32.totalorder (!%p1548_p12), %s1931_s11, 0 }
  0xae   : > { %1272 = dma.done.wait (%p1944_p8), %s275_s6, 256  }
  0xaf   : > { %1274 = vsyncadd (%p1944_p8), %s275_s6, 4294967040  ;;  %s283_s19 = sand.u32 1, %s1476_s18   ;;  %s285_s15 = sand.u32 1, %s1317_s10  }
  0xb0   : > { %s818_s28 = sshll.u32 %s285_s15, 5  ;;  %s284_s3 = scalar_lea.sflag [#allocation10], %s283_s19 }
  0xb1   : > { %s1742_s0 = scalar_lea.vmem [#allocation9], %s818_s28  ;;  %p1945_p12 = scmp.ne.s32.totalorder %s1918_s26, 0 }
  0xb3   : > { %1276 = dma.done.wait (%p1945_p12), %s284_s3, 512  }
  0xb4   : > { %1278 = vsyncadd (%p1945_p12), %s284_s3, 4294966784  ;;  %s294_s7 = sand.u32 1, %s1305_s8   ;;  %p1946_p13 = scmp.ne.s32.totalorder %s1939_s29, 0 }
  0xb5   : > { %s819_s27 = sshll.u32 %s294_s7, 5 }
  0xb6   : > { %s1749_s11 = scalar_lea.vmem [#allocation11], %s819_s27 }
  0xb7   : > { %1280 = dma.done.wait (%p1946_p13), %s284_s3, 512  }
  0xb8   : > { %1282 = vsyncadd (%p1946_p13), %s284_s3, 4294966784  ;;  %s1947_s18 = sld [smem:[#allocation23_spill]]  ;;  %vm348_vm0 = vcmask 261120   ;;  %s353_s22 = sld [smem:[#allocation5]]  ;;  %v1353_v0 = vmov 0.0  }
  0xb9   : > { %349 = vst.msk [vmem:[#allocation2] sm:$0xff] %vm348_vm0, %v1353_v0  ;;  %350 = vst.msk [vmem:[#allocation2 + $0x8] sm:$0xff] %vm348_vm0, %v1353_v0  ;;  %s1948_s29 = sld [smem:[#allocation26_spill]] }
  0xba   : > { %351 = vst.msk [vmem:[#allocation2 + $0x10] sm:$0xff] %vm348_vm0, %v1353_v0  ;;  %352 = vst.msk [vmem:[#allocation2 + $0x18] sm:$0xff] %vm348_vm0, %v1353_v0 }
  0xbe   : > { %s326_s9 = sand.u32 1, %s1947_s18  }
  0xbf   : > { %s820_s24 = sshll.u32 %s326_s9, 5  ;;  %p821_p6 = scmp.ge.s32.totalorder %s1948_s29, %s353_s22 }
  0xc0   : > { %s1762_s26 = scalar_lea.vmem [#allocation12], %s820_s24  ;;  %v1055_v1 = vld [vmem:[%s1742_s0] sm:$0xff] (!%p821_p6)   ;;  %v1056_v2 = vld [vmem:[%s1742_s0 + $0x8] sm:$0xff] (!%p821_p6)   ;;  %v1059_v4 = vld [vmem:[%s1742_s0 + $0x10] sm:$0xff] (!%p821_p6)   ;;  %vm580_vm1 = vcmask (!%p821_p6), 523264  }
  0xc1   : > { %357 = sbr.rel (%p821_p6) target bundleno = 667 (0x29b), region = 52  ;;  %869 = vmatprep.subr.bf16.mxu1 (!%p821_p6), %v1055_v1  ;;  %v1057_v3 = vld [vmem:[%s278_s30] sm:$0xff] (!%p821_p6)   ;;  %v1058_v5 = vld [vmem:[%s278_s30 + $0x8] sm:$0xff] (!%p821_p6)  }
  0xc2   : > { %870 = vmatpush3.bf16.msra.mxu1 (!%p821_p6), %v1055_v1  ;;  %873 = vmatprep.mubr.msk.bf16.mxu1 (!%p821_p6), %vm348_vm0, %v1057_v3  ;;  %v1060_v6 = vld [vmem:[%s1742_s0 + $0x18] sm:$0xff] (!%p821_p6)   ;;  %v1061_v7 = vld [vmem:[%s1749_s11] sm:$0xff] (!%p821_p6)   ;;  %v1062_v8 = vld [vmem:[%s1749_s11 + $0x8] sm:$0xff] (!%p821_p6)  }
  0xc3   : > { %871 = vmatprep.subr.bf16.mxu1 (!%p821_p6), %v1056_v2  ;;  %885 = vmatprep.subr.bf16.mxu0 (!%p821_p6), %v1061_v7  ;;  %v1063_v9 = vld [vmem:[%s1749_s11 + $0x10] sm:$0xff] (!%p821_p6)   ;;  %v1064_v10 = vld [vmem:[%s1749_s11 + $0x18] sm:$0xff] (!%p821_p6)   ;;  %v544_v46 = vld [vmem:[#allocation2] sm:$0xff] (!%p821_p6) }
  0xc4   : > { %886 = vmatpush3.bf16.msra.mxu0 (!%p821_p6), %v1061_v7  ;;  %v546_v45 = vld [vmem:[#allocation2 + $0x10] sm:$0xff] (!%p821_p6)  ;;  %v547_v48 = vld [vmem:[#allocation2 + $0x18] sm:$0xff] (!%p821_p6)  ;;  %v545_v51 = vld [vmem:[#allocation2 + $0x8] sm:$0xff] (!%p821_p6) }
  0xc5   : > { %887 = vmatprep.subr.bf16.mxu0 (!%p821_p6), %v1062_v8 }
  0xc6   : > { %872 = vmatpush3.bf16.msra.mxu1 (!%p821_p6), %v1056_v2 }
  0xc7   : > { %877 = vmatprep.subr.bf16.mxu1 (!%p821_p6), %v1059_v4 }
  0xc8   : > { %888 = vmatpush3.bf16.msra.mxu0 %v1062_v8 }
  0xc9   : > { %874 = vmatmul.mubr.msk.bf16.vlgmr.msra.gmra.mrb[0].mxu1 %vm348_vm0, %v1058_v5  ;;  %889 = vmatprep.subr.bf16.mxu0 %v1063_v9 }
  0xca   : > { %878 = vmatpush3.bf16.msra.mxu1 %v1059_v4  ;;  %881 = vmatprep.mubr.msk.bf16.mxu1 %vm348_vm0, %v1057_v3 }
  0xcb   : > { %879 = vmatprep.subr.bf16.mxu1 %v1060_v6 }
  0xcc   : > { %890 = vmatpush3.bf16.msra.mxu0 %v1063_v9 }
  0xcd   : > { %891 = vmatprep.subr.bf16.mxu0 %v1064_v10 }
  0xce   : > { %880 = vmatpush3.bf16.msra.mxu1 %v1060_v6 }
  0xd0   : > { %892 = vmatpush3.bf16.msra.mxu0 %v1064_v10 }
  0xd1   : > { %882 = vmatmul.mubr.msk.bf16.vlgmr.msra.gmra.mrb[4].mxu1 %vm348_vm0, %v1058_v5 }
 0x19c   : > { %v875_v11 = vpop.f32.mrb[0].mxu1 }
 0x19d   : > { %v838_v12 = vmul.f32 -1.442695, %v875_v11  ;;  %v429_v13 = vpop.f32.mrb[1].mxu1 }
 0x19e   : > { %v836_v14 = vmul.f32 -1.442695, %v429_v13  ;;  %v876_v15 = vpop.f32.mrb[2].mxu1 }
 0x19f   : > { %1065 = vpow2.f32 %v838_v12  ;;  %v839_v16 = vmul.f32 -1.442695, %v876_v15  ;;  %v432_v17 = vpop.f32.mrb[3].mxu1 }
 0x1a0   : > { %1067 = vpow2.f32 %v836_v14  ;;  %v837_v18 = vmul.f32 -1.442695, %v432_v17 }
 0x1a1   : > { %1069 = vpow2.f32 %v839_v16 }
 0x1a2   : > { %1071 = vpow2.f32 %v837_v18 }
 0x1a4   : > { %v883_v19 = vpop.f32.mrb[4].mxu1 }
 0x1a5   : > { %v495_v20 = vpop.f32.mrb[5].mxu1 }
 0x1a6   : > { %v884_v21 = vpop.f32.mrb[6].mxu1 }
 0x1a7   : > { %v498_v22 = vpop.f32.mrb[7].mxu1 }
 0x1a9   : > { %v1066_v23 = vpop.eup %1065 }
 0x1aa   : > { %v1068_v24 = vpop.eup %1067  ;;  %v524_v25 = vadd.f32 1.0, %v1066_v23 }
 0x1ab   : > { %v1070_v26 = vpop.eup %1069  ;;  %v522_v27 = vadd.f32 1.0, %v1068_v24 }
 0x1ac   : > { %v1072_v28 = vpop.eup %1071  ;;  %1073 = vrcp.f32 %v524_v25  ;;  %v525_v29 = vadd.f32 1.0, %v1070_v26 }
 0x1ad   : > { %1075 = vrcp.f32 %v522_v27  ;;  %v523_v30 = vadd.f32 1.0, %v1072_v28 }
 0x1ae   : > { %1077 = vrcp.f32 %v525_v29 }
 0x1af   : > { %1079 = vrcp.f32 %v523_v30 }
 0x1b6   : > { %v1074_v31 = vpop.eup %1073 }
 0x1b7   : > { %v1076_v32 = vpop.eup %1075  ;;  %v536_v33 = vmul.f32 %v1074_v31, %v875_v11 }
 0x1b8   : > { %v1078_v34 = vpop.eup %1077  ;;  %v534_v35 = vmul.f32 %v1076_v32, %v429_v13 }
 0x1b9   : > { %v1080_v36 = vpop.eup %1079  ;;  %v537_v37 = vmul.f32 %v1078_v34, %v876_v15  ;;  %v540_v38 = vmul.f32 %v883_v19, %v536_v33 }
 0x1ba   : > { %v535_v39 = vmul.f32 %v1080_v36, %v432_v17  ;;  %v538_v40 = vmul.f32 %v534_v35, %v495_v20 }
 0x1bb   : > { %v541_v41 = vmul.f32 %v884_v21, %v537_v37 }
 0x1bc   : > { %v539_v42 = vmul.f32 %v535_v39, %v498_v22 }
 0x1bd   : > { %v543_v43 = vpack.c.bf16 %v541_v41, %v540_v38 }
 0x1be   : > { %v542_v44 = vpack.c.bf16 %v539_v42, %v538_v40 }
 0x1c0   : > { %893 = vmatprep.mubr.msk.bf16.mxu0 %vm580_vm1, %v542_v44 }
 0x1c1   : > { %894 = vmatmul.mubr.msk.bf16.vlgmr.msra.gmra.mrb[0].mxu0 %vm580_vm1, %v543_v43 }
 0x294   : > { %v895_v47 = vpop.f32.mrb[0].mxu0 }
 0x295   : > { %v638_v49 = vadd.f32 %v895_v47, %v546_v45  ;;  %v621_v50 = vpop.f32.mrb[1].mxu0 }
 0x296   : > { %v636_v52 = vadd.f32 %v621_v50, %v544_v46  ;;  %v896_v53 = vpop.f32.mrb[2].mxu0 }
 0x297   : > { %642 = vst.msk [vmem:[#allocation2 + $0x10] sm:$0xff] %vm348_vm0, %v638_v49  ;;  %v639_v54 = vadd.f32 %v896_v53, %v547_v48  ;;  %v624_v55 = vpop.f32.mrb[3].mxu0 }
 0x298   : > { %640 = vst.msk [vmem:[#allocation2] sm:$0xff] %vm348_vm0, %v636_v52  ;;  %v637_v56 = vadd.f32 %v624_v55, %v545_v51 }
 0x299   : > { %643 = vst.msk [vmem:[#allocation2 + $0x18] sm:$0xff] %vm348_vm0, %v639_v54 }
 0x29a   : > { %641 = vst.msk [vmem:[#allocation2 + $0x8] sm:$0xff] %vm348_vm0, %v637_v56 }
 0x29b PF: > { %s1949_s25 = sld [smem:[#allocation26_spill]]  ;;  %s1951_s2 = sld [smem:[#allocation28_spill]] }
 0x29c   : > { %s1952_s19 = sld [smem:[#allocation33_spill]]  ;;  %s670_s28 = sshll.u32 %s1762_s26, 4  ;;  %s1800_s28 = int_to_ptr.vmem [resolvable:$true] %s670_s28 }
 0x29d   : > { %s1804_s3 = scalar_lea.sflag [#allocation8], %s326_s9  ;;  %s1181_s0 = scalar_lea.vmem %s1800_s28, 512 }
 0x29e   : > { %v649_v59 = vld [vmem:[#allocation2 + $0x10] sm:$0xff]  ;;  %p1182_p5 = scmp.ne.s32.totalorder %s1800_s28, %s1181_s0  ;;  %s1354_s7 = smov [#allocation12]  }
 0x29f   : > { %v647_v57 = vld [vmem:[#allocation2] sm:$0xff]  ;;  %654 = vst.msk [vmem:[%s1762_s26 + $0x10] sm:$0xff] %vm348_vm0, %v649_v59  ;;  %s1185_s27 = sshll.u32 %s1354_s7, 4  ;;  %s1186_s27 = int_to_ptr.vmem [resolvable:$false] %s1185_s27 }
 0x2a0   : > { %652 = vst.msk [vmem:[%s1762_s26] sm:$0xff] %vm348_vm0, %v647_v57  ;;  %v650_v60 = vld [vmem:[#allocation2 + $0x18] sm:$0xff]  ;;  %s1187_s11 = scalar_lea.vmem %s1186_s27, 1024  ;;  %p1188_p3 = scmp.lt.s32.totalorder %s1800_s28, %s1186_s27 }
 0x2a1   : > { %v648_v58 = vld [vmem:[#allocation2 + $0x8] sm:$0xff]  ;;  %s854_s12 = sshll.u32 %s1949_s25, 9  ;;  %655 = vst.msk [vmem:[%s1762_s26 + $0x18] sm:$0xff] %vm348_vm0, %v650_v60  ;;  %p1953_p1 = scmp.ne.s32.totalorder %s1951_s2, 0 }
 0x2a2   : > { %653 = vst.msk [vmem:[%s1762_s26 + $0x8] sm:$0xff] %vm348_vm0, %v648_v58  ;;  %s1795_s15 = scalar_lea.hbm %s1952_s19, %s854_s12  ;;  %p1189_p4 = scmp.lt.s32.totalorder %s1187_s11, %s1181_s0 }
 0x2a3   : > { %p1183_p10 = pnand %p1182_p5, %p1953_p1 }
 0x2a4   : > { %p1190_p0 = por %p1189_p4, %p1188_p3 }
 0x2a5   : > { %p1184_p11 = pneg %p1183_p10 }
 0x2a7   : > { %p1191_p9 = pnand %p1190_p0, %p1184_p11 }
 0x2a9   : > { %1194 = shalt.err (!%p1191_p9)
}
 0x2aa   : > { %s1195_s18 = scalar_lea.hbm %s1795_s15, 512  ;;  %s1199_s24 = scalar_lea.hbm %s1952_s19, 2560 }
 0x2ab   : > { %p1196_p2 = scmp.ne.s32.totalorder %s1795_s15, %s1195_s18  ;;  %p1200_p12 = scmp.lt.u32.totalorder %s1795_s15, %s1952_s19 }
 0x2ac   : > { %p1201_p13 = scmp.lt.u32.totalorder %s1199_s24, %s1195_s18  ;;  %p1203_p5 = scmp.lt.u32.totalorder %s1195_s18, %s1795_s15 }
 0x2ad   : > { %p1197_p7 = pnand %p1196_p2, %p1953_p1 }
 0x2ae   : > { %p1202_p6 = por %p1201_p13, %p1200_p12 }
 0x2af   : > { %p1198_p8 = pneg %p1197_p7 }
 0x2b0   : > { %p1204_p10 = por %p1203_p5, %p1202_p6 }
 0x2b2   : > { %p1205_p11 = pnand %p1204_p10, %p1198_p8 }
 0x2b4   : > { %1208 = shalt.err (!%p1205_p11)
}
 0x2b5   : > { %s1355_s25 = smov 128   ;;  %s1356_s23 = smov 8  }
 0x2b6   : > { %907 = dma.vmem_to_hbm [thread:$0]  (%p1953_p1), %s1800_s28, 512, %s1795_s15, %s1804_s3, %s1355_s25, %s1355_s25, %s1356_s23  }
 0x2b7 PF: > { %s1954_s12 = sld [smem:[#allocation22_spill]]  ;;  %s1955_s6 = sld [smem:[#allocation29_spill]] }
 0x2b8   : > { %p928_p3 = scmp.ge.s32.totalorder %s1345_s17, 2 }
 0x2bd   : > { %s685_s30 = sand.u32 1, %s1954_s12   ;;  %p1956_p4 = scmp.ne.s32.totalorder %s1955_s6, 0 }
 0x2be   : > { %s686_s0 = scalar_lea.sflag [#allocation8], %s685_s30 }
 0x2bf   : > { %p924_p0 = pnand %p928_p3, %p1956_p4 }
 0x2c1   : > { %1284 = dma.done.wait (!%p924_p0), %s686_s0, 512  }
 0x2c2   : > { %1286 = vsyncadd (!%p924_p0), %s686_s0, 4294966784  ;;  %s29_s17 = sadd.s32 1, %s1345_s17   ;;  %s1958_s30 = sld [smem:[#allocation23_spill]] }
 0x2c3   : > { %p1833_p9 = scmp.ge.s32.totalorder %s29_s17, 7   ;;  %s1959_s6 = sld [smem:[#allocation24_spill]] }
 0x2c4   : > { %s1960_s2 = sld [smem:[#allocation27_spill]]  ;;  %s1961_s15 = sld [smem:[#allocation25_spill]] }
 0x2c5   : > { %s1962_s11 = sld [smem:[#allocation30_spill]]  ;;  %s1965_s0 = smov %s1305_s8 }
 0x2c6   : > { %s1966_s8 = smov %s1309_s1  ;;  %s1967_s1 = smov %s1682_s5 }
 0x2c7   : > { %s1968_s9 = smov %s1317_s10  ;;  %s1970_s12 = smov %s1329_s13 }
 0x2c8   : > { %s1971_s13 = smov %s1333_s14  ;;  %s1972_s14 = smov %s1631_s21 }
 0x2c9   :  { %28 = sbr.rel (!%p1833_p9) target bundleno = 26 (0x1a), region = 114 }
 0x2ca   : > { %s1964_s7 = smov %s1960_s2  ;;  %s1969_s10 = smov %s1961_s15 }
 0x2cb   : > { %s1973_s15 = smov %s1341_s16  ;;  %s1974_s16 = smov %s1976_s20 }
 0x2d0   :  { %691 = vsyncpa [#allocation7], 1 }
 0x2d1   :  { %693 = vsyncpa [#allocation7 + $0x1], 1 }
 0x2d2   :  { %694 = vsyncpa [#allocation10], 1 }
 0x2d3   :  { %696 = vsyncpa [#allocation10 + $0x1], 1 }
 0x2d4   :  { %697 = vsyncpa [#allocation8], 1 }
 0x2d5   :  { %699 = vsyncpa [#allocation8 + $0x1], 1 }

</bundles_post_ra>
